<compile_context>
chip_gen: v5e
topology: v5e:2x2
jax: 0.10.0
libtpu: 0.0.40
codegen_flags: <defaults>
</compile_context>

<pallas_src>
import jax
import jax.numpy as jnp
from jax.experimental import pallas as pl
from jax.experimental.pallas import tpu as pltpu


def _linreg_kernel(x_ref, w_ref, b_ref, o_ref):
    # x_ref: (TB, F) VMEM (streamed), w_ref: (1, F) VMEM (resident),
    # b_ref: (1,) SMEM scalar, o_ref: (TB, 1) VMEM.
    x = x_ref[...]
    w = w_ref[...]                                   # (1, F) broadcasts against (TB, F)
    b = b_ref[0]                                     # scalar bias from SMEM
    acc = jnp.sum(x * w, axis=-1, keepdims=True) + b  # VPU mul + XLU lane reduce
    o_ref[...] = acc.astype(o_ref.dtype)


def _pick_batch_tile(B, F, itemsize=4, vmem_budget_bytes=8 << 20):
    """Largest batch tile (multiple of 8, <=512) whose double-buffered f32 x block
    stays well inside scoped VMEM on every TPU generation (v5e 16 MiB default,
    v7x 64 MiB physical)."""
    max_rows = max(8, vmem_budget_bytes // (2 * F * itemsize))
    tb = min(512, max_rows, ((B + 7) // 8) * 8)
    return max(8, (tb // 8) * 8)


def linear_regression_forward(x, weight, bias):
    """x: (B, F) f32; weight: (1, F) f32 (PyTorch nn.Linear layout); bias: (1,) f32.
    Returns the equivalent of torch.squeeze(self.fc(x)): (B,) for B > 1, scalar for B == 1."""
    B, F = x.shape
    TB = _pick_batch_tile(B, F)
    n_tiles = pl.cdiv(B, TB)
    Bp = n_tiles * TB
    if Bp != B:
        x = jnp.pad(x, ((0, Bp - B), (0, 0)))        # padded rows are discarded below

    out = pl.pallas_call(
        _linreg_kernel,
        out_shape=jax.ShapeDtypeStruct((Bp, 1), x.dtype),
        grid=(n_tiles,),
        in_specs=[
            pl.BlockSpec((TB, F), lambda i: (i, 0)),             # streamed batch tiles
            pl.BlockSpec((1, F), lambda i: (0, 0)),              # weight resident across grid
            pl.BlockSpec(memory_space=pltpu.MemorySpace.SMEM),   # bias scalar in SMEM
        ],
        out_specs=pl.BlockSpec((TB, 1), lambda i: (i, 0)),
        compiler_params=pltpu.CompilerParams(
            dimension_semantics=("parallel",),  # batch tiles independent -> both TCs on v7x
            vmem_limit_bytes=32 << 20,
        ),
    )(x, weight, bias)

    # torch.squeeze removes all size-1 dims (trailing output dim; also batch when B == 1).
    return jnp.squeeze(out[:B])


def init_params(key, features_size):
    """Match the module init: xavier_normal_ on weight, nn.Linear default bias init."""
    kw, kb = jax.random.split(key)
    fan_in, fan_out = features_size, 1
    std = (2.0 / (fan_in + fan_out)) ** 0.5
    weight = std * jax.random.normal(kw, (1, features_size), dtype=jnp.float32)
    bound = 1.0 / (fan_in ** 0.5)
    bias = jax.random.uniform(kb, (1,), dtype=jnp.float32, minval=-bound, maxval=bound)
    return weight, bias


if __name__ == "__main__":
    key = jax.random.PRNGKey(0)
    kx, kp, kx2 = jax.random.split(key, 3)

    features_size = 32
    batch = 8
    x = jax.random.normal(kx, (batch, features_size), dtype=jnp.float32)
    weight, bias = init_params(kp, features_size)

    pred = jax.block_until_ready(linear_regression_forward(x, weight, bias))
    ref = jnp.squeeze(x @ weight.T + bias)
    assert pred.shape == (batch,), pred.shape
    assert jnp.allclose(pred, ref, atol=1e-5, rtol=1e-5)

    # Multi-tile / padded-batch path: batch not a multiple of the 512-row tile.
    batch2 = 600
    x2 = jax.random.normal(kx2, (batch2, features_size), dtype=jnp.float32)
    pred2 = jax.block_until_ready(linear_regression_forward(x2, weight, bias))
    ref2 = jnp.squeeze(x2 @ weight.T + bias)
    assert pred2.shape == (batch2,), pred2.shape
    assert jnp.allclose(pred2, ref2, atol=1e-5, rtol=1e-5)

    print("KERNEL_OK")
</pallas_src>

<mosaic_0001>
module attributes {stable_mosaic.version = 11 : i64} {
  func.func @_linreg_kernel(%arg0: i32, %arg1: memref<8x32xf32, #tpu.memory_space<vmem>>, %arg2: memref<1x32xf32, #tpu.memory_space<vmem>>, %arg3: memref<1xf32, #tpu.memory_space<smem>>, %arg4: memref<8x1xf32, #tpu.memory_space<vmem>>) attributes {dimension_semantics = [#tpu.dimension_semantics<parallel>], iteration_bounds = array<i64: 1>, scalar_prefetch = 0 : i64, scratch_operands = 0 : i64, tpu.core_type = #tpu.core_type<tc>, window_params = [{transform_indices = @transform_0, window_bounds = array<i64: 8, 32>}, {pipeline_mode = #tpu.pipeline_mode<synchronous>, transform_indices = @transform_1, window_bounds = array<i64: 1, 32>}, {transform_indices = @transform_2, window_bounds = array<i64: 1>}, {transform_indices = @transform_3, window_bounds = array<i64: 8, 1>}]} {
    %c0 = arith.constant 0 : index
    %c0_0 = arith.constant 0 : index
    %0 = vector.load %arg1[%c0, %c0_0] : memref<8x32xf32, #tpu.memory_space<vmem>>, vector<8x32xf32>
    %c0_1 = arith.constant 0 : index
    %c0_2 = arith.constant 0 : index
    %1 = vector.load %arg2[%c0_1, %c0_2] : memref<1x32xf32, #tpu.memory_space<vmem>>, vector<1x32xf32>
    %c0_3 = arith.constant 0 : index
    %2 = memref.load %arg3[%c0_3] : memref<1xf32, #tpu.memory_space<smem>>
    %3 = vector.broadcast %1 : vector<1x32xf32> to vector<8x32xf32>
    %4 = arith.mulf %0, %3 : vector<8x32xf32>
    %cst = arith.constant dense<0.000000e+00> : vector<8xf32>
    %5 = vector.multi_reduction <add>, %4, %cst [1] : vector<8x32xf32> to vector<8xf32>
    %6 = vector.shape_cast %5 : vector<8xf32> to vector<8x1xf32>
    %7 = vector.broadcast %2 : f32 to vector<8x1xf32>
    %8 = arith.addf %6, %7 : vector<8x1xf32>
    %c0_4 = arith.constant 0 : index
    %c0_5 = arith.constant 0 : index
    %9 = vector.load %arg4[%c0_4, %c0_5] : memref<8x1xf32, #tpu.memory_space<vmem>>, vector<8x1xf32>
    tpu.vector_store %arg4[%c0_4, %c0_5], %8 {strides = array<i32>} : memref<8x1xf32, #tpu.memory_space<vmem>>, vector<8x1xf32>,
    return
  }
  func.func @transform_0(%arg0: i32) -> (i32, i32) {
    %c0_i32 = arith.constant 0 : i32
    %c0_i32_0 = arith.constant 0 : i32
    return %arg0, %c0_i32 : i32, i32
  }
  func.func @transform_1(%arg0: i32) -> (i32, i32) {
    %c0_i32 = arith.constant 0 : i32
    %c0_i32_0 = arith.constant 0 : i32
    %c0_i32_1 = arith.constant 0 : i32
    return %c0_i32, %c0_i32_0 : i32, i32
  }
  func.func @transform_2(%arg0: i32) -> i32 {
    %c0_i32 = arith.constant 0 : i32
    %c0_i32_0 = arith.constant 0 : i32
    return %c0_i32 : i32
  }
  func.func @transform_3(%arg0: i32) -> (i32, i32) {
    %c0_i32 = arith.constant 0 : i32
    %c0_i32_0 = arith.constant 0 : i32
    return %arg0, %c0_i32 : i32, i32
  }
}

</mosaic_0001>

<bundles_post_ra>
// kernel: tpu_custom_call.1
= control target key start
LH: loop header
LB: loop body
LE: loop exit
PB: predicated region body
PF: predicated region fallthrough
CT: control target
= control target key end

     0   :  { %9 = vsyncpa [#allocation4], 0  ;;  %s77_s15 = smov [#allocation3]   ;;  %s110_s0 = inlined_call_operand.hbm [shape: f32[8,32], index: 0, kind: input, shape index: {}]   ;;  %s111_s1 = inlined_call_operand.vmem [shape: f32[1,32], index: 1, kind: input, shape index: {}]   ;;  %s112_s2 = inlined_call_operand.<no memory space> [shape: f32[1], index: 2, kind: input, shape index: {}]   ;;  %s113_s3 = inlined_call_operand.vmem [shape: f32[8,1], index: 3, kind: output, shape index: {}]  }
   0x1   :  { %s15_s14 = sshll.u32 %s110_s0, 4  ;;  %s17_s16 = sshll.u32 %s77_s15, 4  ;;  %s16_s14 = int_to_ptr.hbm [resolvable:$true] %s15_s14  ;;  %s18_s16 = int_to_ptr.vmem [resolvable:$true] %s17_s16 }
   0x2   :  { %20 = dma.hbm_to_vmem [thread:$0]  %s16_s14, 128, %s18_s16, [#allocation4]  }
   0x3   :  { %75 = dma.done.wait [#allocation4], 128  }
   0x4   :  { %76 = vsyncadd [#allocation4], 4294967168  ;;  %v29_v0 = vld [vmem:[#allocation3] sm:$0xff]  ;;  %vm36_vm0 = vcmask 261120   ;;  %v40_v4 = vstv %s112_s2  ;;  %vm42_vm1 = vcmask 7168  }
   0x5   :  { %v50_v1 = vld [vmem:[%s111_s1] ss:$0 sm:$0xff] }
   0x6   :  { %v35_v2 = vmul.f32 %v50_v1, %v29_v0 }
   0x8   :  { %v37_v3 = vsel %vm36_vm0, %v35_v2, 0.0 }
   0x9   :  { %38 = vadd.xlane.f32.xlu0 %v37_v3 }
  0x7c   :  { %v39_v5 = vpop.xlane.xlu0 %38 }
  0x7d   :  { %v41_v6 = vadd.f32 %v40_v4, %v39_v5 }
  0x7f   :  { %43 = vst.msk [vmem:[%s113_s3] sm:$0xff] %vm42_vm1, %v41_v6 }
  0x80   :  { %48 = vsyncpa [#allocation4], 1 }

</bundles_post_ra>
